<compile_context>
chip_gen: v7x
topology: tpu7x:2x2x1
jax: 0.10.0
libtpu: 0.0.40
codegen_flags: <defaults>
</compile_context>

<pallas_src>
import functools

import jax
import jax.numpy as jnp
from jax.experimental import pallas as pl
from jax.experimental.pallas import tpu as pltpu

EPS = 1e-5  # torch.nn.LayerNorm default


# ----------------------------------------------------------------------------
# helpers
# ----------------------------------------------------------------------------
def _cdiv(a, b):
    return (a + b - 1) // b


def _round_up(x, m):
    return _cdiv(x, m) * m


def _round_down(x, m):
    return (x // m) * m


def _sublane_align(dtype):
    # rows per packed sublane tile: 8 for 4-byte, 16 for 2-byte, 32 for 1-byte
    return max(8, 32 // jnp.dtype(dtype).itemsize)


def _chip_config():
    """Returns (vmem_limit_bytes, two_tensorcores_hint, target_block_bytes)."""
    try:
        cap = int(pltpu.get_tpu_info().vmem_capacity_bytes)
    except Exception:  # conservative (v7x-sized) fallback
        cap = 64 << 20
    vmem_limit = int(min(max(cap - (16 << 20), 32 << 20), 100 << 20))
    # <= 64 MiB physical VMEM => v7x-class chip: 2 TensorCores, ~3.2 TB/s HBM.
    two_cores = cap <= (64 << 20)
    target = (8 << 20) if two_cores else (4 << 20)
    # double-buffered in+out blocks plus f32 in-kernel temps must fit.
    target = min(target, vmem_limit // 8)
    return vmem_limit, two_cores, target


def _pick_rows(n_rows, row_bytes, align, target_bytes, two_cores):
    """Rows of the (row-blocked) tensor processed per grid step."""
    tm = max(align, _round_down(target_bytes // max(row_bytes, 1), align))
    if two_cores and n_rows * row_bytes >= (8 << 20):
        # keep >= 8 grid steps so both TensorCores stay fed on v7x-class chips
        tm = min(tm, max(align, _round_up(_cdiv(n_rows, 8), align)))
    if tm >= n_rows:
        return n_rows  # single full-extent block (always layout-legal)
    return tm          # multiple of the sublane pack -> layout-legal


# ----------------------------------------------------------------------------
# kernels
# ----------------------------------------------------------------------------
def _ln_rows_kernel(x_ref, gamma_ref, beta_ref, o_ref):
    # x_ref: (tile_rows, D) — feature dim on the lane axis.
    x = x_ref[...].astype(jnp.float32)
    mean = jnp.mean(x, axis=-1, keepdims=True)
    c = x - mean
    var = jnp.mean(c * c, axis=-1, keepdims=True)            # biased, like torch
    scale = jax.lax.rsqrt(var + EPS) * gamma_ref[...]
    o_ref[...] = (c * scale + beta_ref[...]).astype(o_ref.dtype)


def _ln_packed_kernel(x_ref, seg_ref, gamma_ref, beta_ref, o_ref, *, inv_d):
    # x_ref: (tile_rows, 128) — each 128-lane row packs 128//D original rows.
    # seg_ref: (128, 128) block-diagonal ones matrix: one MXU matmul does the
    # segmented sum AND broadcasts it back across each D-lane segment.
    x = x_ref[...].astype(jnp.float32)
    seg = seg_ref[...]
    mean = jnp.dot(x, seg, preferred_element_type=jnp.float32,
                   precision=jax.lax.Precision.HIGHEST) * inv_d
    c = x - mean
    var = jnp.dot(c * c, seg, preferred_element_type=jnp.float32,
                  precision=jax.lax.Precision.HIGHEST) * inv_d     # biased
    scale = jax.lax.rsqrt(var + EPS) * gamma_ref[...]
    o_ref[...] = (c * scale + beta_ref[...]).astype(o_ref.dtype)


# ----------------------------------------------------------------------------
# wrappers
# ----------------------------------------------------------------------------
def _layernorm_rows(x, gamma, beta, cfg, block_rows=None):
    """Natural [N, D] layout.  Lane-dense when D % 128 == 0; otherwise a
    correct masked-store fallback (still exactly 1 HBM read + 1 write)."""
    N, D = x.shape
    vmem_limit, two_cores, target = cfg
    itemsize = jnp.dtype(x.dtype).itemsize
    align = _sublane_align(x.dtype)
    row_bytes = D * max(itemsize, 4)  # f32 in-kernel temps dominate
    tm = block_rows if block_rows is not None else _pick_rows(
        N, row_bytes, align, target, two_cores)
    g2 = gamma.reshape(1, D).astype(jnp.float32)
    b2 = beta.reshape(1, D).astype(jnp.float32)

    return pl.pallas_call(
        _ln_rows_kernel,
        out_shape=jax.ShapeDtypeStruct((N, D), x.dtype),
        grid=(_cdiv(N, tm),),
        in_specs=[
            pl.BlockSpec((tm, D), lambda i: (i, 0)),
            # constant block index -> gamma/beta stay VMEM-resident
            pl.BlockSpec((1, D), lambda i: (0, 0)),
            pl.BlockSpec((1, D), lambda i: (0, 0)),
        ],
        out_specs=pl.BlockSpec((tm, D), lambda i: (i, 0)),
        compiler_params=pltpu.CompilerParams(
            dimension_semantics=("parallel",),
            vmem_limit_bytes=vmem_limit,
        ),
    )(x, g2, b2)


def _layernorm_packed(x, gamma, beta, cfg, block_rows=None):
    """128 % D == 0 and (N*D) % 128 == 0: free contiguous reshape to 128 lanes,
    MXU segmented reduction.  No transposes, no padding, no slices."""
    N, D = x.shape
    r = 128 // D
    M = (N * D) // 128
    vmem_limit, two_cores, target = cfg
    itemsize = jnp.dtype(x.dtype).itemsize
    align = _sublane_align(x.dtype)
    row_bytes = 128 * max(itemsize, 4)
    tm = block_rows if block_rows is not None else _pick_rows(
        M, row_bytes, align, target, two_cores)

    xp = x.reshape(M, 128)  # contiguous row-major reshape: free under jit
    lane = jnp.arange(128)
    seg = (lane[:, None] // D == lane[None, :] // D).astype(jnp.float32)
    g2 = jnp.tile(gamma.astype(jnp.float32), r).reshape(1, 128)
    b2 = jnp.tile(beta.astype(jnp.float32), r).reshape(1, 128)

    out = pl.pallas_call(
        functools.partial(_ln_packed_kernel, inv_d=1.0 / D),
        out_shape=jax.ShapeDtypeStruct((M, 128), x.dtype),
        grid=(_cdiv(M, tm),),
        in_specs=[
            pl.BlockSpec((tm, 128), lambda i: (i, 0)),
            pl.BlockSpec((128, 128), lambda i: (0, 0)),
            pl.BlockSpec((1, 128), lambda i: (0, 0)),
            pl.BlockSpec((1, 128), lambda i: (0, 0)),
        ],
        out_specs=pl.BlockSpec((tm, 128), lambda i: (i, 0)),
        compiler_params=pltpu.CompilerParams(
            dimension_semantics=("parallel",),
            vmem_limit_bytes=vmem_limit,
        ),
    )(xp, seg, g2, b2)
    return out.reshape(N, D)  # free contiguous reshape back


@jax.jit
def identity_norm_layer(x, gamma, beta):
    """LayerNorm over the last dim of x [N, D] with affine params gamma/beta [D].

    Equivalent to IdentityNormLayer.forward applied to b.srcdata['h'].
    """
    # TODO(synk): DGL graph plumbing (b.srcdata['h']) has no Pallas equivalent;
    # callers pass the node-feature matrix directly.
    N, D = x.shape
    cfg = _chip_config()
    if D % 128 != 0 and 128 % D == 0 and (N * D) % 128 == 0:
        return _layernorm_packed(x, gamma, beta, cfg)
    # D % 128 == 0 -> lane-dense natural layout.  Other D (doesn't divide 128,
    # or N leaves a sub-128 remainder) -> same kernel with masked stores; still
    # a single HBM read + write, with some lane waste only in that rare case.
    return _layernorm_rows(x, gamma, beta, cfg)


# ----------------------------------------------------------------------------
# reference + demo
# ----------------------------------------------------------------------------
def _ref_layernorm(x, gamma, beta):
    xf = x.astype(jnp.float32)
    mean = jnp.mean(xf, axis=-1, keepdims=True)
    var = jnp.mean((xf - mean) ** 2, axis=-1, keepdims=True)
    y = (xf - mean) * jax.lax.rsqrt(var + EPS) * gamma.astype(jnp.float32) \
        + beta.astype(jnp.float32)
    return y.astype(x.dtype)


if __name__ == "__main__":
    key = jax.random.PRNGKey(0)
    k1, k2, k3 = jax.random.split(key, 3)
    cfg = _chip_config()

    # Case 1: small feature dim (hidden=32, like the graph layer) -> packed
    # lane-dense path (free reshape to 128 lanes + MXU segmented reduction).
    N1, D1 = 200, 32
    x1 = jax.random.normal(k1, (N1, D1), dtype=jnp.float32)
    g1 = jnp.ones((D1,), jnp.float32) + 0.1 * jax.random.normal(k2, (D1,), jnp.float32)
    b1 = 0.1 * jax.random.normal(k3, (D1,), jnp.float32)
    out1 = jax.block_until_ready(identity_norm_layer(x1, g1, b1))
    assert jnp.allclose(out1, _ref_layernorm(x1, g1, b1), atol=1e-4, rtol=1e-4), \
        "mismatch vs reference (packed path)"

    # Case 2: lane-aligned D=128 rows path with a forced small tile so the last
    # grid block is ragged (100 = 3*32 + 4) -> exercises cdiv grid + masked writes.
    N2, D2 = 100, 128
    x2 = jax.random.normal(k1, (N2, D2), dtype=jnp.float32)
    g2 = jnp.ones((D2,), jnp.float32)
    b2 = jnp.zeros((D2,), jnp.float32)
    out2 = jax.block_until_ready(_layernorm_rows(x2, g2, b2, cfg, block_rows=32))
    assert jnp.allclose(out2, _ref_layernorm(x2, g2, b2), atol=1e-4, rtol=1e-4), \
        "mismatch vs reference (rows path, ragged last block)"

    # Case 3: bf16 I/O (halves HBM traffic; compute stays f32 inside the kernel).
    x3 = x1.astype(jnp.bfloat16)
    out3 = jax.block_until_ready(identity_norm_layer(x3, g1, b1))
    assert jnp.allclose(out3.astype(jnp.float32),
                        _ref_layernorm(x3, g1, b1).astype(jnp.float32),
                        atol=2e-2, rtol=2e-2), "mismatch vs reference (bf16)"

    # Case 4: D=48 does not divide 128 and N=37 not a multiple of 8 ->
    # generic fallback (full-extent block, masked stores).
    N4, D4 = 37, 48
    x4 = jax.random.normal(k2, (N4, D4), dtype=jnp.float32)
    g4 = 1.0 + 0.05 * jax.random.normal(k3, (D4,), jnp.float32)
    b4 = 0.05 * jax.random.normal(k1, (D4,), jnp.float32)
    out4 = jax.block_until_ready(identity_norm_layer(x4, g4, b4))
    assert jnp.allclose(out4, _ref_layernorm(x4, g4, b4), atol=1e-4, rtol=1e-4), \
        "mismatch vs reference (generic fallback)"

    print("KERNEL_OK")
</pallas_src>

<mosaic_0001>
module attributes {stable_mosaic.version = 11 : i64} {
  func.func @_ln_packed_kernel(%arg0: i32, %arg1: memref<50x128xf32, #tpu.memory_space<vmem>>, %arg2: memref<128x128xf32, #tpu.memory_space<vmem>>, %arg3: memref<1x128xf32, #tpu.memory_space<vmem>>, %arg4: memref<1x128xf32, #tpu.memory_space<vmem>>, %arg5: memref<50x128xf32, #tpu.memory_space<vmem>>) attributes {dimension_semantics = [#tpu.dimension_semantics<parallel>], iteration_bounds = array<i64: 1>, scalar_prefetch = 0 : i64, scratch_operands = 0 : i64, tpu.core_type = #tpu.core_type<tc>, window_params = [{transform_indices = @transform_0, window_bounds = array<i64: 50, 128>}, {pipeline_mode = #tpu.pipeline_mode<synchronous>, transform_indices = @transform_1, window_bounds = array<i64: 128, 128>}, {pipeline_mode = #tpu.pipeline_mode<synchronous>, transform_indices = @transform_2, window_bounds = array<i64: 1, 128>}, {pipeline_mode = #tpu.pipeline_mode<synchronous>, transform_indices = @transform_3, window_bounds = array<i64: 1, 128>}, {transform_indices = @transform_4, window_bounds = array<i64: 50, 128>}]} {
    %c0 = arith.constant 0 : index
    %c0_0 = arith.constant 0 : index
    %0 = vector.load %arg1[%c0, %c0_0] : memref<50x128xf32, #tpu.memory_space<vmem>>, vector<50x128xf32>
    %c0_1 = arith.constant 0 : index
    %c0_2 = arith.constant 0 : index
    %1 = vector.load %arg2[%c0_1, %c0_2] : memref<128x128xf32, #tpu.memory_space<vmem>>, vector<128x128xf32>
    %cst = arith.constant dense<0.000000e+00> : vector<50x128xf32>
    %2 = tpu.matmul %0, %1, %cst {dimension_numbers = #tpu.dot_dimension_numbers<[1], [0], [0], [1], [0, 0, 1, 1], [], []>, precision = #tpu.contract_precision<fp32>} : vector<50x128xf32>, vector<128x128xf32>, vector<50x128xf32> -> vector<50x128xf32>
    %cst_3 = arith.constant 3.125000e-02 : f32
    %3 = vector.broadcast %cst_3 : f32 to vector<50x128xf32>
    %4 = arith.mulf %2, %3 : vector<50x128xf32>
    %5 = arith.subf %0, %4 : vector<50x128xf32>
    %6 = arith.mulf %5, %5 : vector<50x128xf32>
    %cst_4 = arith.constant dense<0.000000e+00> : vector<50x128xf32>
    %7 = tpu.matmul %6, %1, %cst_4 {dimension_numbers = #tpu.dot_dimension_numbers<[1], [0], [0], [1], [0, 0, 1, 1], [], []>, precision = #tpu.contract_precision<fp32>} : vector<50x128xf32>, vector<128x128xf32>, vector<50x128xf32> -> vector<50x128xf32>
    %cst_5 = arith.constant 3.125000e-02 : f32
    %8 = vector.broadcast %cst_5 : f32 to vector<50x128xf32>
    %9 = arith.mulf %7, %8 : vector<50x128xf32>
    %cst_6 = arith.constant 9.99999974E-6 : f32
    %10 = vector.broadcast %cst_6 : f32 to vector<50x128xf32>
    %11 = arith.addf %9, %10 : vector<50x128xf32>
    %12 = math.rsqrt %11 : vector<50x128xf32>
    %c0_7 = arith.constant 0 : index
    %c0_8 = arith.constant 0 : index
    %13 = vector.load %arg3[%c0_7, %c0_8] : memref<1x128xf32, #tpu.memory_space<vmem>>, vector<1x128xf32>
    %14 = vector.broadcast %13 : vector<1x128xf32> to vector<50x128xf32>
    %15 = arith.mulf %12, %14 : vector<50x128xf32>
    %16 = arith.mulf %5, %15 : vector<50x128xf32>
    %c0_9 = arith.constant 0 : index
    %c0_10 = arith.constant 0 : index
    %17 = vector.load %arg4[%c0_9, %c0_10] : memref<1x128xf32, #tpu.memory_space<vmem>>, vector<1x128xf32>
    %18 = vector.broadcast %17 : vector<1x128xf32> to vector<50x128xf32>
    %19 = arith.addf %16, %18 : vector<50x128xf32>
    %c0_11 = arith.constant 0 : index
    %c0_12 = arith.constant 0 : index
    %20 = vector.load %arg5[%c0_11, %c0_12] : memref<50x128xf32, #tpu.memory_space<vmem>>, vector<50x128xf32>
    tpu.vector_store %arg5[%c0_11, %c0_12], %19 {strides = array<i32>} : memref<50x128xf32, #tpu.memory_space<vmem>>, vector<50x128xf32>,
    return
  }
  func.func @transform_0(%arg0: i32) -> (i32, i32) {
    %c0_i32 = arith.constant 0 : i32
    %c0_i32_0 = arith.constant 0 : i32
    return %arg0, %c0_i32 : i32, i32
  }
  func.func @transform_1(%arg0: i32) -> (i32, i32) {
    %c0_i32 = arith.constant 0 : i32
    %c0_i32_0 = arith.constant 0 : i32
    %c0_i32_1 = arith.constant 0 : i32
    return %c0_i32, %c0_i32_0 : i32, i32
  }
  func.func @transform_2(%arg0: i32) -> (i32, i32) {
    %c0_i32 = arith.constant 0 : i32
    %c0_i32_0 = arith.constant 0 : i32
    %c0_i32_1 = arith.constant 0 : i32
    return %c0_i32, %c0_i32_0 : i32, i32
  }
  func.func @transform_3(%arg0: i32) -> (i32, i32) {
    %c0_i32 = arith.constant 0 : i32
    %c0_i32_0 = arith.constant 0 : i32
    %c0_i32_1 = arith.constant 0 : i32
    return %c0_i32, %c0_i32_0 : i32, i32
  }
  func.func @transform_4(%arg0: i32) -> (i32, i32) {
    %c0_i32 = arith.constant 0 : i32
    %c0_i32_0 = arith.constant 0 : i32
    return %arg0, %c0_i32 : i32, i32
  }
}

</mosaic_0001>

<bundles_post_ra>
// kernel: tile.13
= control target key start
LH: loop header
LB: loop body
LE: loop exit
PB: predicated region body
PF: predicated region fallthrough
CT: control target
= control target key end

     0   :  { %s22_s0 = inlined_call_operand.vmem [shape: f32[32], index: 0, kind: input, shape index: {}]   ;;  %s23_s1 = inlined_call_operand.vmem [shape: f32[4,32], index: 1, kind: output, shape index: {}]  }
   0x1   :  { %v4_v0 = vld [vmem:[%s22_s0] ss:$0 sm:$0xff] }
   0x2   :  { %5 = vst [vmem:[%s23_s1] sm:$0xf] %v4_v0 }

// kernel: tile.14
= control target key start
LH: loop header
LB: loop body
LE: loop exit
PB: predicated region body
PF: predicated region fallthrough
CT: control target
= control target key end

     0   :  { %vm7_vm0 = vcmask 261120   ;;  %s37_s8 = smov 32   ;;  %s38_s9 = smov 64   ;;  %vm13_vm1 = vcmask 1048320   ;;  %vm19_vm2 = vcmask 785920   ;;  %vm25_vm3 = vcmask 523520   ;;  %s55_s0 = inlined_call_operand.vmem [shape: f32[4,32], index: 0, kind: input, shape index: {}]   ;;  %s56_s1 = inlined_call_operand.vmem [shape: f32[1,128], index: 1, kind: output, shape index: {}]  }
   0x1   :  { %v4_v0 = vld [vmem:[%s55_s0] sm:$0xf]  ;;  %s36_s0 = smov 96  }
   0x2   :  { %5 = vst [vmem:[#allocation1] sm:$0xf] %v4_v0 }
   0x9   :  { %v10_v1 = vld [vmem:[#allocation1 + $0x3] sm:$0x1]   ;;  %v22_v2 = vld [vmem:[#allocation1 + $0x1] sm:$0x1]   ;;  %v6_v3 = vld [vmem:[#allocation1] sm:$0x1]  }
   0xa   :  { %11 = vrot.lane.b32.xlu0 %v10_v1, %s36_s0  ;;  %23 = vrot.lane.b32.xlu1 %v22_v2, %s37_s8  ;;  %v16_v4 = vld [vmem:[#allocation1 + $0x2] sm:$0x1]   ;;  %8 = vst.msk [vmem:[#allocation0] sm:$0x1] %vm7_vm0, %v6_v3  }
   0xe   :  { %17 = vrot.lane.b32.xlu0 %v16_v4, %s38_s9 }
  0x7c   :  { %v12_v5 = vpop.permute.xlu0 %11   ;;  %v24_v6 = vpop.permute.xlu1 %23  }
  0x7d   :  { %14 = vst.msk [vmem:[#allocation0] sm:$0x1] %vm13_vm1, %v12_v5  }
  0x80   :  { %v18_v7 = vpop.permute.xlu0 %17  }
  0x81   :  { %20 = vst.msk [vmem:[#allocation0] sm:$0x1] %vm19_vm2, %v18_v7  }
  0x82   :  { %26 = vst.msk [vmem:[#allocation0] sm:$0x1] %vm25_vm3, %v24_v6  }
  0x89   :  { %v30_v8 = vld [vmem:[#allocation0] sm:$0x1] }
  0x8a   :  { %32 = vst [vmem:[%s56_s1] sm:$0x1] %v30_v8 }

// kernel: identity_norm_layer.1
= control target key start
LH: loop header
LB: loop body
LE: loop exit
PB: predicated region body
PF: predicated region fallthrough
CT: control target
= control target key end

     0   :  { %v4305_v0 = vmov 0.0|0.0   ;;  %vm3286_vm0 = vmmov 0   ;;  %v4296_v4 = vmov 0.0   ;;  %s4290_s1 = inlined_call_operand.vmem [shape: f32[128,128], index: 1, kind: input, shape index: {}]   ;;  %s4291_s0 = inlined_call_operand.vmem [shape: f32[50,128], index: 0, kind: input, shape index: {}]   ;;  %s4292_s2 = inlined_call_operand.vmem [shape: f32[1,128], index: 2, kind: input, shape index: {}]   ;;  %s4293_s3 = inlined_call_operand.vmem [shape: f32[1,128], index: 3, kind: input, shape index: {}]   ;;  %s4294_s4 = inlined_call_operand.vmem [shape: f32[50,128], index: 4, kind: output, shape index: {}]  }
   0x1   :  { %2840 = vmatprep.subr.bf16.mxu0 %v4305_v0  ;;  %v24_v1 = vld [vmem:[%s4290_s1] sm:$0xff]  ;;  %v25_v2 = vld [vmem:[%s4290_s1 + $0x8] sm:$0xff]  ;;  %v26_v3 = vld [vmem:[%s4290_s1 + $0x10] sm:$0xff]  ;;  %2236 = vmatprep.mubr.msk.f32.mxu0 %vm3286_vm0, %v4296_v4 }
   0x2   :  { %v41_v5 = vand.u32 4294901760, %v24_v1  ;;  %v44_v6 = vand.u32 4294901760, %v25_v2  ;;  %v27_v7 = vld [vmem:[%s4290_s1 + $0x18] sm:$0xff]  ;;  %v47_v8 = vand.u32 4294901760, %v26_v3  ;;  %2984 = vmatprep.subr.bf16.mxu1 %v4305_v0  ;;  %2554 = vmatprep.mubr.msk.f32.mxu1 %vm3286_vm0, %v4296_v4  ;;  %v28_v10 = vld [vmem:[%s4290_s1 + $0x20] sm:$0xff]  ;;  %v29_v11 = vld [vmem:[%s4290_s1 + $0x28] sm:$0xff] }
   0x3   :  { %v50_v9 = vand.u32 4294901760, %v27_v7  ;;  %v53_v14 = vand.u32 4294901760, %v28_v10  ;;  %v56_v15 = vand.u32 4294901760, %v29_v11  ;;  %v3347_v16 = vld [vmem:[%s4290_s1 + $0x30] sm:$0xff]  ;;  %v3352_v17 = vld [vmem:[%s4290_s1 + $0x38] sm:$0xff]  ;;  %v3358_v18 = vld [vmem:[%s4291_s0] sm:$0xff] }
   0x4   :  { %v3337_v12 = vpack.c.bf16 %v44_v6, %v41_v5  ;;  %4319 = vst [vmem:[#allocation2_spill] sm:$0xff] %v3358_v18  ;;  %v59_v20 = vand.u32 4294901760, %v3347_v16  ;;  %v62_v21 = vand.u32 4294901760, %v3352_v17  ;;  %v3370_v22 = vld [vmem:[%s4290_s1 + $0x40] sm:$0xff]  ;;  %v3375_v23 = vld [vmem:[%s4290_s1 + $0x48] sm:$0xff]  ;;  %v3379_v24 = vand.u32 4294901760, %v3358_v18 }
   0x5   :  { %v3340_v13 = vpack.c.bf16 %v50_v9, %v47_v8  ;;  %v3361_v19 = vpack.c.bf16 %v56_v15, %v53_v14  ;;  %v3381_v25 = vsub.f32 %v24_v1, %v41_v5  ;;  %v3383_v26 = vsub.f32 %v25_v2, %v44_v6  ;;  %v3397_v30 = vld [vmem:[%s4291_s0 + $0x8] sm:$0xff]  ;;  %v3404_v31 = vld [vmem:[%s4290_s1 + $0x50] sm:$0xff]  ;;  %v3409_v32 = vld [vmem:[%s4290_s1 + $0x58] sm:$0xff] }
   0x6   :  { %2842 = vmatpush3.bf16.msra.mxu0 %v3337_v12  ;;  %2986 = vmatpush3.bf16.msra.mxu1 %v3337_v12  ;;  %v3390_v27 = vpack.c.bf16 %v62_v21, %v59_v20  ;;  %v65_v28 = vand.u32 4294901760, %v3370_v22  ;;  %v68_v29 = vand.u32 4294901760, %v3375_v23  ;;  %4320 = vst [vmem:[#allocation3_spill] sm:$0xff] %v3397_v30  ;;  %v3415_v33 = vld [vmem:[%s4290_s1 + $0x60] sm:$0xff]  ;;  %v3419_v34 = vsub.f32 %v3358_v18, %v3379_v24  ;;  %v3428_v37 = vld [vmem:[%s4290_s1 + $0x68] sm:$0xff]  ;;  %v3452_v46 = vld [vmem:[%s4291_s0 + $0x10] sm:$0xff] }
   0x7   :  { %2843 = vmatprep.subr.bf16.mxu0 %v4305_v0  ;;  %2987 = vmatprep.subr.bf16.mxu1 %v4305_v0  ;;  %v3421_v35 = vsub.f32 %v26_v3, %v47_v8  ;;  %v3423_v36 = vsub.f32 %v27_v7, %v50_v9  ;;  %v194_v38 = vand.u32 4294901760, %v3381_v25  ;;  %v201_v39 = vand.u32 4294901760, %v3383_v26  ;;  %4321 = vst [vmem:[#allocation4_spill] sm:$0xff] %v3452_v46  ;;  %v38_v48 = vld [vmem:[%s4290_s1 + $0x70] sm:$0xff]  ;;  %v3462_v49 = vld [vmem:[%s4290_s1 + $0x78] sm:$0xff] }
   0x8   :  { %v3433_v40 = vand.u32 4294901760, %v3397_v30  ;;  %v3440_v41 = vpack.c.bf16 %v68_v29, %v65_v28  ;;  %v71_v42 = vand.u32 4294901760, %v3404_v31  ;;  %v74_v43 = vand.u32 4294901760, %v3409_v32  ;;  %v3512_v3 = vld [vmem:[%s4291_s0 + $0x18] sm:$0xff] }
   0x9   :  { %v77_v44 = vand.u32 4294901760, %v3415_v33  ;;  %v3447_v45 = vsub.f32 %v28_v10, %v53_v14  ;;  %v80_v47 = vand.u32 4294901760, %v3428_v37  ;;  %v4295_v50 = vand.u32 4294901760, %v3419_v34  ;;  %4322 = vst [vmem:[#allocation5_spill] sm:$0xff] %v3512_v3 }
   0xa   :  { %2845 = vmatpush3.bf16.msra.mxu0 %v3340_v13  ;;  %2989 = vmatpush3.bf16.msra.mxu1 %v3340_v13  ;;  %v4301_v51 = vand.u32 4294901760, %v3421_v35  ;;  %v4300_v52 = vand.u32 4294901760, %v3423_v36  ;;  %v195_v53 = vsub.f32 %v3381_v25, %v194_v38  ;;  %v202_v54 = vsub.f32 %v3383_v26, %v201_v39 }
   0xb   :  { %2846 = vmatprep.subr.bf16.mxu0 %v4305_v0  ;;  %2990 = vmatprep.subr.bf16.mxu1 %v4305_v0  ;;  %v3475_v55 = vsub.f32 %v3397_v30, %v3433_v40  ;;  %v3477_v56 = vsub.f32 %v29_v11, %v56_v15  ;;  %v3484_v57 = vpack.c.bf16 %v74_v43, %v71_v42  ;;  %v3487_v58 = vand.u32 4294901760, %v3452_v46 }
   0xc   :  { %v83_v59 = vand.u32 4294901760, %v38_v48  ;;  %v86_v60 = vand.u32 4294901760, %v3462_v49  ;;  %v4299_v61 = vand.u32 4294901760, %v3447_v45  ;;  %v3496_v62 = vpack.c.bf16 %v80_v47, %v77_v44 }
   0xd   :  { %v3501_v63 = vsub.f32 %v3419_v34, %v4295_v50  ;;  %v209_v1 = vsub.f32 %v3421_v35, %v4301_v51  ;;  %v216_v2 = vsub.f32 %v3423_v36, %v4300_v52  ;;  %v196_v5 = vand.u32 4294901760, %v195_v53  ;;  %v3548_v53 = vld [vmem:[%s4291_s0 + $0x20] sm:$0xff] }
   0xe   :  { %2848 = vmatpush3.bf16.msra.mxu0 %v3361_v19  ;;  %2992 = vmatpush3.bf16.msra.mxu1 %v3361_v19  ;;  %v203_v6 = vand.u32 4294901760, %v202_v54  ;;  %v4298_v7 = vand.u32 4294901760, %v3475_v55  ;;  %v229_v8 = vand.u32 4294901760, %v3477_v56  ;;  %v3519_v9 = vsub.f32 %v3452_v46, %v3487_v58  ;;  %4323 = vst [vmem:[#allocation6_spill] sm:$0xff] %v3548_v53 }
   0xf   :  { %2849 = vmatprep.subr.bf16.mxu0 %v4305_v0  ;;  %2993 = vmatprep.subr.bf16.mxu1 %v4305_v0  ;;  %v3524_v10 = vsub.f32 %v3347_v16, %v59_v20  ;;  %v3529_v11 = vsub.f32 %v3352_v17, %v62_v21  ;;  %v3536_v14 = vsub.f32 %v3447_v45, %v4299_v61  ;;  %v3539_v15 = vand.u32 4294901760, %v3512_v3 }
  0x10   :  { %v3542_v16 = vpack.c.bf16 %v86_v60, %v83_v59  ;;  %v125_v20 = vand.u32 4294901760, %v3501_v63  ;;  %v210_v17 = vand.u32 4294901760, %v209_v1  ;;  %v217_v21 = vand.u32 4294901760, %v216_v2 }
  0x11   :  { %v3550_v54 = vpack.c.bf16 %v203_v6, %v196_v5  ;;  %v134_v50 = vsub.f32 %v3475_v55, %v4298_v7  ;;  %v3556_v4 = vsub.f32 %v3477_v56, %v229_v8  ;;  %v3561_v63 = vsub.f32 %v3370_v22, %v65_v28 }
  0x12   :  { %2851 = vmatpush3.bf16.msra.mxu0 %v3390_v27  ;;  %2995 = vmatpush3.bf16.msra.mxu1 %v3390_v27  ;;  %v4302_v1 = vand.u32 4294901760, %v3519_v9  ;;  %v236_v2 = vand.u32 4294901760, %v3524_v10  ;;  %v243_v5 = vand.u32 4294901760, %v3529_v11  ;;  %v3570_v6 = vsub.f32 %v3375_v23, %v68_v29  ;;  %v3596_v29 = vld [vmem:[%s4291_s0 + $0x28] sm:$0xff] }
  0x13   :  { %2852 = vmatprep.subr.bf16.mxu0 %v4305_v0  ;;  %2996 = vmatprep.subr.bf16.mxu1 %v4305_v0  ;;  %4324 = vst [vmem:[#allocation7_spill] sm:$0xff] %v3550_v54  ;;  %v224_v22 = vand.u32 4294901760, %v3536_v14  ;;  %v3577_v28 = vsub.f32 %v3512_v3, %v3539_v15  ;;  %v3580_v7 = vand.u32 4294901760, %v3548_v53  ;;  %v3585_v61 = vsub.f32 %v3404_v31, %v71_v42 }
  0x14   :  { %v3591_v23 = vsub.f32 %v3409_v32, %v74_v43  ;;  %4325 = vst [vmem:[#allocation8_spill] sm:$0xff] %v3596_v29  ;;  %v3601_v14 = vsub.f32 %v3415_v33, %v77_v44  ;;  %v3604_v31 = vsub.f32 %v3428_v37, %v80_v47  ;;  %v3606_v42 = vsub.f32 %v38_v48, %v83_v59 }
  0x15   :  { %v3608_v52 = vpack.c.bf16 %v217_v21, %v210_v17  ;;  %v135_v51 = vand.u32 4294901760, %v134_v50  ;;  %v250_v32 = vand.u32 4294901760, %v3561_v63  ;;  %v3612_v43 = vsub.f32 %v3462_v49, %v86_v60 }
  0x16   :  { %2854 = vmatpush3.bf16.msra.mxu0 %v3440_v41  ;;  %2998 = vmatpush3.bf16.msra.mxu1 %v3440_v41  ;;  %v144_v33 = vsub.f32 %v3519_v9, %v4302_v1  ;;  %v237_v44 = vsub.f32 %v3524_v10, %v236_v2  ;;  %v244_v37 = vsub.f32 %v3529_v11, %v243_v5  ;;  %v257_v47 = vand.u32 4294901760, %v3570_v6 }
  0x17   :  { %2855 = vmatprep.subr.bf16.mxu0 %v4305_v0  ;;  %2999 = vmatprep.subr.bf16.mxu1 %v4305_v0  ;;  %4326 = vst [vmem:[#allocation9_spill] sm:$0xff] %v3608_v52  ;;  %v3626_v49 = vsub.f32 %v3548_v53, %v3580_v7  ;;  %v264_v50 = vand.u32 4294901760, %v3585_v61  ;;  %v3630_v59 = vand.u32 4294901760, %v3596_v29  ;;  %v271_v60 = vand.u32 4294901760, %v3591_v23 }
  0x18   :  { %v278_v17 = vand.u32 4294901760, %v3601_v14  ;;  %v285_v21 = vand.u32 4294901760, %v3604_v31  ;;  %v299_v48 = vand.u32 4294901760, %v3612_v43  ;;  %v3642_v53 = vpack.c.bf16 %v201_v39, %v194_v38  ;;  %v3661_v38 = vld [vmem:[%s4291_s0 + $0x30] sm:$0x3] }
  0x19   :  { %v4328_v3 = vand.u32 4294901760, %v3421_v35  ;;  %v4331_v30 = vand.u32 4294901760, %v3447_v45  ;;  %v231_v1 = vand.u32 4294901760, %v3556_v4  ;;  %v3663_v39 = vpack.c.bf16 %v243_v5, %v236_v2 }
  0x1a   :  { %2857 = vmatpush3.bf16.msra.mxu0 %v3484_v57  ;;  %3001 = vmatpush3.bf16.msra.mxu1 %v3484_v57  ;;  %4327 = vst [vmem:[#allocation10_spill] sm:$0xff] %v3642_v53  ;;  %v145_v4 = vand.u32 4294901760, %v144_v33  ;;  %v4339_v53 = vand.u32 4294901760, %v3577_v28 }
  0x1b   :  { %2858 = vmatprep.subr.bf16.mxu0 %v4305_v0  ;;  %3002 = vmatprep.subr.bf16.mxu1 %v4305_v0  ;;  %v3652_v18 = vpack.c.bf16 %v229_v8, %v4331_v30  ;;  %v4335_v30 = vmov 0.0|0.0   ;;  %v3670_v8 = vpack.c.bf16 %v285_v21, %v278_v17 }
  0x1c   :  { %v154_v2 = vsub.f32 %v3577_v28, %v4339_v53  ;;  %v258_v53 = vsub.f32 %v3570_v6, %v257_v47 }
  0x1d   :  { %4332 = vst [vmem:[#allocation12_spill] sm:$0xff] %v3652_v18  ;;  %4336 = vst [vmem:[#allocation14_spill] sm:$0xff] %v3670_v8  ;;  %v3686_v8 = vand.u32 4294901760, %v3661_v38 }
  0x1e   :  { %2860 = vmatpush3.bf16.msra.mxu0 %v3496_v62  ;;  %3004 = vmatpush3.bf16.msra.mxu1 %v3496_v62  ;;  %v155_v5 = vand.u32 4294901760, %v154_v2 }
  0x1f   :  { %2861 = vmatprep.subr.bf16.mxu0 %v4305_v0  ;;  %3005 = vmatprep.subr.bf16.mxu1 %v4305_v0 }
  0x22   :  { %2863 = vmatpush3.bf16.msra.mxu0 %v3542_v16  ;;  %3007 = vmatpush3.bf16.msra.mxu1 %v3542_v16 }
  0x23   :  { %2864 = vmatprep.subr.bf16.mxu0 %v4305_v0  ;;  %3008 = vmatprep.subr.bf16.mxu1 %v4305_v0  ;;  %v4329_v0 = vand.u32 4294901760, %v3423_v36 }
  0x25   :  { %2237 = vmatmul.mubr.f32.vlgmr.msra.gmra.mrb[0].mxu0 %v125_v20  ;;  %v3648_v46 = vpack.c.bf16 %v4329_v0, %v4328_v3  ;;  %v4333_v20 = vmov 0.0   ;;  %v3665_v0 = vpack.c.bf16 %v257_v47, %v250_v32  ;;  %v3667_v3 = vpack.c.bf16 %v271_v60, %v264_v50 }
  0x26   :  { %2866 = vmatpush3.bf16.msra.mxu0 %v3550_v54  ;;  %2239 = vmatprep.mubr.msk.f32.mxu0 %vm3286_vm0, %v4333_v20  ;;  %v4337_v54 = vand.u32 4294901760, %v3606_v42 }
  0x27   :  { %4330 = vst [vmem:[#allocation11_spill] sm:$0xff] %v3648_v46  ;;  %4334 = vst [vmem:[#allocation13_spill] sm:$0xff] %v3667_v3  ;;  %2867 = vmatprep.subr.bf16.mxu0 %v4335_v30  ;;  %v251_v46 = vsub.f32 %v3561_v63, %v250_v32  ;;  %v3683_v3 = vsub.f32 %v3596_v29, %v3630_v59  ;;  %v245_v32 = vand.u32 4294901760, %v244_v37  ;;  %v4340_v29 = vand.u32 4294901760, %v3626_v49 }
  0x28   :  { %v3674_v18 = vpack.c.bf16 %v299_v48, %v4337_v54  ;;  %v3689_v54 = vpack.c.bf16 %v231_v1, %v224_v22  ;;  %v3701_v1 = vsub.f32 %v3661_v38, %v3686_v8  ;;  %v272_v37 = vsub.f32 %v3591_v23, %v271_v60 }
  0x29   :  { %2240 = vmatmul.mubr.f32.gmra.mrb[2].mxu0 %v135_v51  ;;  %v238_v51 = vand.u32 4294901760, %v237_v44  ;;  %v252_v33 = vand.u32 4294901760, %v251_v46  ;;  %v259_v46 = vand.u32 4294901760, %v258_v53  ;;  %v265_v44 = vsub.f32 %v3585_v61, %v264_v50 }
  0x2a   :  { %4338 = vst [vmem:[#allocation15_spill] sm:$0xff] %v3674_v18  ;;  %2869 = vmatpush3.bf16.msra.mxu0 %v3608_v52  ;;  %2242 = vmatprep.mubr.msk.f32.mxu0 %vm3286_vm0, %v4333_v20  ;;  %v164_v18 = vsub.f32 %v3626_v49, %v4340_v29  ;;  %v173_v52 = vand.u32 4294901760, %v3683_v3  ;;  %v183_v2 = vand.u32 4294901760, %v3701_v1  ;;  %v273_v60 = vand.u32 4294901760, %v272_v37 }
  0x2b   :  { %2870 = vmatprep.subr.bf16.mxu0 %v4335_v30  ;;  %v3704_v22 = vpack.c.bf16 %v245_v32, %v238_v51  ;;  %v3717_v51 = vpack.c.bf16 %v259_v46, %v252_v33  ;;  %v266_v50 = vand.u32 4294901760, %v265_v44  ;;  %v4341_v46 = vand.u32 4294901760, %v3606_v42 }
  0x2c   :  { %v165_v29 = vand.u32 4294901760, %v164_v18  ;;  %v174_v47 = vsub.f32 %v3683_v3, %v173_v52  ;;  %v300_v44 = vsub.f32 %v3612_v43, %v299_v48  ;;  %v3751_v48 = vpack.c.bf16 %v3383_v26, %v3381_v25 }
  0x2d   :  { %2243 = vmatmul.mubr.f32.gmra.mrb[4].mxu0 %v145_v4  ;;  %v279_v4 = vsub.f32 %v3601_v14, %v278_v17  ;;  %v184_v17 = vsub.f32 %v3701_v1, %v183_v2  ;;  %v3727_v53 = vpack.c.bf16 %v273_v60, %v266_v50  ;;  %v3758_v60 = vpack.c.bf16 %v3423_v36, %v3421_v35 }
  0x2e   :  { %2872 = vmatpush3.bf16.msra.mxu0 %v3689_v54  ;;  %2245 = vmatprep.mubr.msk.f32.mxu0 %vm3286_vm0, %v4333_v20  ;;  %v175_v18 = vand.u32 4294901760, %v174_v47  ;;  %v3767_v25 = vpack.c.bf16 %v3477_v56, %v3447_v45  ;;  %v3776_v26 = vpack.c.bf16 %v3529_v11, %v3524_v10  ;;  %v3785_v35 = vpack.c.bf16 %v3570_v6, %v3561_v63  ;;  %v4343_v10 = vld [vmem:[#allocation10_spill] sm:$0xff]  ;;  %v4345_v63 = vld [vmem:[#allocation11_spill] sm:$0xff]  ;;  %v4347_v6 = vld [vmem:[#allocation12_spill] sm:$0xff] }
  0x2f   :  { %2873 = vmatprep.subr.bf16.mxu0 %v4335_v30  ;;  %v280_v32 = vand.u32 4294901760, %v279_v4  ;;  %v185_v37 = vand.u32 4294901760, %v184_v17  ;;  %v301_v4 = vand.u32 4294901760, %v300_v44  ;;  %v3794_v36 = vpack.c.bf16 %v3591_v23, %v3585_v61  ;;  %v4351_v23 = vld [vmem:[#allocation14_spill] sm:$0xff]  ;;  %v4355_v17 = vld [vmem:[#allocation4_spill] sm:$0xff] }
  0x30   :  { %v3803_v45 = vpack.c.bf16 %v3604_v31, %v3601_v14  ;;  %v3812_v56 = vpack.c.bf16 %v3612_v43, %v3606_v42  ;;  %v4342_v61 = vand.u32 4294901760, %v3419_v34  ;;  %v4344_v11 = vand.u32 4294901760, %v3475_v55 }
  0x31   :  { %2246 = vmatmul.mubr.f32.gmra.mrb[6].mxu0 %v155_v5  ;;  %v286_v5 = vsub.f32 %v3604_v31, %v285_v21  ;;  %v293_v21 = vsub.f32 %v3606_v42, %v4341_v46  ;;  %v4352_v14 = vld [vmem:[#allocation15_spill] sm:$0xff] }
  0x32   :  { %2875 = vmatpush3.bf16.msra.mxu0 %v3704_v22  ;;  %2248 = vmatprep.mubr.msk.f32.mxu0 %vm3286_vm0, %v4333_v20 }
  0x33   :  { %2876 = vmatprep.subr.bf16.mxu0 %v4335_v30  ;;  %v287_v33 = vand.u32 4294901760, %v286_v5  ;;  %v294_v47 = vand.u32 4294901760, %v293_v21 }
  0x35   :  { %2249 = vmatmul.mubr.f32.gmra.mrb[8].mxu0 %v165_v29  ;;  %v3737_v29 = vpack.c.bf16 %v287_v33, %v280_v32  ;;  %v3743_v50 = vpack.c.bf16 %v301_v4, %v294_v47 }
  0x36   :  { %2878 = vmatpush3.bf16.msra.mxu0 %v3717_v51  ;;  %2251 = vmatprep.mubr.msk.f32.mxu0 %vm3286_vm0, %v4333_v20 }
  0x37   :  { %2879 = vmatprep.subr.bf16.mxu0 %v4335_v30 }
  0x39   :  { %2252 = vmatmul.mubr.f32.gmra.mrb[10].mxu0 %v175_v18 }
  0x3a   :  { %2881 = vmatpush3.bf16.msra.mxu0 %v3727_v53  ;;  %2254 = vmatprep.mubr.msk.f32.mxu0 %vm3286_vm0, %v4333_v20 }
  0x3b   :  { %2882 = vmatprep.subr.bf16.mxu0 %v4335_v30 }
  0x3d   :  { %2255 = vmatmul.mubr.f32.gmra.mrb[12].mxu0 %v185_v37 }
  0x3e   :  { %2884 = vmatpush3.bf16.msra.mxu0 %v3737_v29  ;;  %2289 = vmatprep.mubr.msk.f32.mxu0 %vm3286_vm0, %v4333_v20 }
  0x3f   :  { %2885 = vmatprep.subr.bf16.mxu0 %v4335_v30 }
  0x42   :  { %2887 = vmatpush3.bf16.msra.mxu0 %v3743_v50 }
  0x43   :  { %2888 = vmatprep.subr.bf16.mxu0 %v4335_v30 }
  0x45   :  { %2290 = vmatmul.mubr.f32.vlgmr.msra.gmra.mrb[0].mxu0 %v3379_v24 }
  0x46   :  { %2890 = vmatpush3.bf16.msra.mxu0 %v3751_v48  ;;  %2292 = vmatprep.mubr.msk.f32.mxu0 %vm3286_vm0, %v4333_v20 }
  0x47   :  { %2891 = vmatprep.subr.bf16.mxu0 %v4335_v30 }
  0x49   :  { %2293 = vmatmul.mubr.f32.gmra.mrb[2].mxu0 %v3433_v40 }
  0x4a   :  { %2893 = vmatpush3.bf16.msra.mxu0 %v3758_v60  ;;  %2295 = vmatprep.mubr.msk.f32.mxu0 %vm3286_vm0, %v4333_v20 }
  0x4b   :  { %2894 = vmatprep.subr.bf16.mxu0 %v4335_v30 }
  0x4d   :  { %2296 = vmatmul.mubr.f32.gmra.mrb[4].mxu0 %v3487_v58 }
  0x4e   :  { %2896 = vmatpush3.bf16.msra.mxu0 %v3767_v25  ;;  %2298 = vmatprep.mubr.msk.f32.mxu0 %vm3286_vm0, %v4333_v20 }
  0x4f   :  { %2897 = vmatprep.subr.bf16.mxu0 %v4335_v30 }
  0x51   :  { %2299 = vmatmul.mubr.f32.gmra.mrb[6].mxu0 %v3539_v15 }
  0x52   :  { %2899 = vmatpush3.bf16.msra.mxu0 %v3776_v26  ;;  %2301 = vmatprep.mubr.msk.f32.mxu0 %vm3286_vm0, %v4333_v20 }
  0x53   :  { %2900 = vmatprep.subr.bf16.mxu0 %v4335_v30 }
  0x55   :  { %2302 = vmatmul.mubr.f32.gmra.mrb[8].mxu0 %v3580_v7 }
  0x56   :  { %2902 = vmatpush3.bf16.msra.mxu0 %v3785_v35  ;;  %2304 = vmatprep.mubr.msk.f32.mxu0 %vm3286_vm0, %v4333_v20 }
  0x57   :  { %2903 = vmatprep.subr.bf16.mxu0 %v4335_v30 }
  0x59   :  { %2305 = vmatmul.mubr.f32.gmra.mrb[10].mxu0 %v3630_v59 }
  0x5a   :  { %2905 = vmatpush3.bf16.msra.mxu0 %v3794_v36  ;;  %2307 = vmatprep.mubr.msk.f32.mxu0 %vm3286_vm0, %v4333_v20 }
  0x5b   :  { %2906 = vmatprep.subr.bf16.mxu0 %v4335_v30 }
  0x5d   :  { %2308 = vmatmul.mubr.f32.gmra.mrb[12].mxu0 %v3686_v8 }
  0x5e   :  { %2908 = vmatpush3.bf16.msra.mxu0 %v3803_v45  ;;  %2342 = vmatprep.mubr.msk.f32.mxu0 %vm3286_vm0, %v4333_v20 }
  0x5f   :  { %2909 = vmatprep.subr.bf16.mxu0 %v4335_v30 }
  0x62   :  { %2911 = vmatpush3.bf16.msra.mxu0 %v3812_v56 }
  0x63   :  { %2912 = vmatprep.subr.bf16.mxu0 %v4335_v30 }
  0x65   :  { %2343 = vmatmul.mubr.f32.vlgmr.msra.gmra.mrb[0].mxu0 %v3419_v34  ;;  %v4346_v34 = vand.u32 4294901760, %v3519_v9 }
  0x66   :  { %2914 = vmatpush3.bf16.msra.mxu0 %v3337_v12  ;;  %2345 = vmatprep.mubr.msk.f32.mxu0 %vm3286_vm0, %v4333_v20 }
  0x67   :  { %2915 = vmatprep.subr.bf16.mxu0 %v4335_v30 }
  0x69   :  { %2346 = vmatmul.mubr.f32.gmra.mrb[2].mxu0 %v3475_v55  ;;  %v4348_v55 = vand.u32 4294901760, %v3577_v28 }
  0x6a   :  { %2917 = vmatpush3.bf16.msra.mxu0 %v3340_v13  ;;  %2348 = vmatprep.mubr.msk.f32.mxu0 %vm3286_vm0, %v4333_v20 }
  0x6b   :  { %2918 = vmatprep.subr.bf16.mxu0 %v4335_v30 }
  0x6d   :  { %2349 = vmatmul.mubr.f32.gmra.mrb[4].mxu0 %v3519_v9  ;;  %v4349_v9 = vand.u32 4294901760, %v3626_v49 }
  0x6e   :  { %2920 = vmatpush3.bf16.msra.mxu0 %v3361_v19  ;;  %2351 = vmatprep.mubr.msk.f32.mxu0 %vm3286_vm0, %v4333_v20 }
  0x6f   :  { %2921 = vmatprep.subr.bf16.mxu0 %v4335_v30 }
  0x71   :  { %2352 = vmatmul.mubr.f32.gmra.mrb[6].mxu0 %v3577_v28  ;;  %v4350_v28 = vld [vmem:[#allocation13_spill] sm:$0xff] }
  0x72   :  { %2923 = vmatpush3.bf16.msra.mxu0 %v3390_v27  ;;  %2354 = vmatprep.mubr.msk.f32.mxu0 %vm3286_vm0, %v4333_v20 }
  0x73   :  { %2924 = vmatprep.subr.bf16.mxu0 %v4335_v30 }
  0x75   :  { %2355 = vmatmul.mubr.f32.gmra.mrb[8].mxu0 %v3626_v49 }
  0x76   :  { %2926 = vmatpush3.bf16.msra.mxu0 %v3440_v41  ;;  %2357 = vmatprep.mubr.msk.f32.mxu0 %vm3286_vm0, %v4333_v20 }
  0x77   :  { %2927 = vmatprep.subr.bf16.mxu0 %v4335_v30 }
  0x79   :  { %2358 = vmatmul.mubr.f32.gmra.mrb[10].mxu0 %v3683_v3 }
  0x7a   :  { %2929 = vmatpush3.bf16.msra.mxu0 %v3484_v57  ;;  %2360 = vmatprep.mubr.msk.f32.mxu0 %vm3286_vm0, %v4333_v20 }
  0x7b   :  { %2930 = vmatprep.subr.bf16.mxu0 %v4335_v30 }
  0x7d   :  { %2361 = vmatmul.mubr.f32.gmra.mrb[12].mxu0 %v3701_v1 }
  0x7e   :  { %2932 = vmatpush3.bf16.msra.mxu0 %v3496_v62  ;;  %2395 = vmatprep.mubr.msk.f32.mxu0 %vm3286_vm0, %v4333_v20 }
  0x7f   :  { %2933 = vmatprep.subr.bf16.mxu0 %v4335_v30 }
  0x82   :  { %2935 = vmatpush3.bf16.msra.mxu0 %v3542_v16 }
  0x83   :  { %2936 = vmatprep.subr.bf16.mxu0 %v4335_v30 }
  0x85   :  { %2396 = vmatmul.mubr.f32.vlgmr.msra.gmra.mrb[0].mxu0 %v4342_v61 }
  0x86   :  { %2938 = vmatpush3.bf16.msra.mxu0 %v4343_v10  ;;  %2398 = vmatprep.mubr.msk.f32.mxu0 %vm3286_vm0, %v4333_v20 }
  0x87   :  { %2939 = vmatprep.subr.bf16.mxu0 %v4335_v30 }
  0x89   :  { %2399 = vmatmul.mubr.f32.gmra.mrb[2].mxu0 %v4344_v11 }
  0x8a   :  { %2941 = vmatpush3.bf16.msra.mxu0 %v4345_v63  ;;  %2401 = vmatprep.mubr.msk.f32.mxu0 %vm3286_vm0, %v4333_v20 }
  0x8b   :  { %2942 = vmatprep.subr.bf16.mxu0 %v4335_v30 }
  0x8d   :  { %2402 = vmatmul.mubr.f32.gmra.mrb[4].mxu0 %v4346_v34  ;;  %v4356_v34 = vld [vmem:[#allocation5_spill] sm:$0xff] }
  0x8e   :  { %2944 = vmatpush3.bf16.msra.mxu0 %v4347_v6  ;;  %2404 = vmatprep.mubr.msk.f32.mxu0 %vm3286_vm0, %v4333_v20 }
  0x8f   :  { %2945 = vmatprep.subr.bf16.mxu0 %v4335_v30 }
  0x91   :  { %2405 = vmatmul.mubr.f32.gmra.mrb[6].mxu0 %v4348_v55 }
  0x92   :  { %2947 = vmatpush3.bf16.msra.mxu0 %v3663_v39  ;;  %2407 = vmatprep.mubr.msk.f32.mxu0 %vm3286_vm0, %v4333_v20 }
  0x93   :  { %2948 = vmatprep.subr.bf16.mxu0 %v4335_v30 }
  0x95   :  { %2408 = vmatmul.mubr.f32.gmra.mrb[8].mxu0 %v4349_v9 }
  0x96   :  { %2950 = vmatpush3.bf16.msra.mxu0 %v3665_v0  ;;  %2410 = vmatprep.mubr.msk.f32.mxu0 %vm3286_vm0, %v4333_v20 }
  0x97   :  { %2951 = vmatprep.subr.bf16.mxu0 %v4335_v30 }
  0x99   :  { %2411 = vmatmul.mubr.f32.gmra.mrb[10].mxu0 %v173_v52 }
  0x9a   :  { %2953 = vmatpush3.bf16.msra.mxu0 %v4350_v28  ;;  %2413 = vmatprep.mubr.msk.f32.mxu0 %vm3286_vm0, %v4333_v20 }
  0x9b   :  { %2954 = vmatprep.subr.bf16.mxu0 %v4335_v30 }
  0x9d   :  { %2414 = vmatmul.mubr.f32.gmra.mrb[12].mxu0 %v183_v2 }
  0x9e   :  { %2956 = vmatpush3.bf16.msra.mxu0 %v4351_v23  ;;  %2448 = vmatprep.mubr.msk.f32.mxu0 %vm3286_vm0, %v4333_v20 }
  0x9f   :  { %2957 = vmatprep.subr.bf16.mxu0 %v4335_v30 }
  0xa2   :  { %2959 = vmatpush3.bf16.msra.mxu0 %v4352_v14 }
  0xa3   :  { %2960 = vmatprep.subr.bf16.mxu0 %v4335_v30 }
  0xa5   :  { %2449 = vmatmul.mubr.f32.vlgmr.msra.gmra.mrb[0].mxu0 %v3379_v24 }
  0xa6   :  { %2962 = vmatpush3.bf16.msra.mxu0 %v3337_v12  ;;  %2451 = vmatprep.mubr.msk.f32.mxu0 %vm3286_vm0, %v4333_v20 }
  0xa7   :  { %2963 = vmatprep.subr.bf16.mxu0 %v4335_v30 }
  0xa9   :  { %2452 = vmatmul.mubr.f32.gmra.mrb[2].mxu0 %v3433_v40 }
  0xaa   :  { %2965 = vmatpush3.bf16.msra.mxu0 %v3340_v13  ;;  %2454 = vmatprep.mubr.msk.f32.mxu0 %vm3286_vm0, %v4333_v20 }
  0xab   :  { %2966 = vmatprep.subr.bf16.mxu0 %v4335_v30 }
  0xad   :  { %2455 = vmatmul.mubr.f32.gmra.mrb[4].mxu0 %v3487_v58 }
  0xae   :  { %2968 = vmatpush3.bf16.msra.mxu0 %v3361_v19  ;;  %2457 = vmatprep.mubr.msk.f32.mxu0 %vm3286_vm0, %v4333_v20 }
  0xaf   :  { %2969 = vmatprep.subr.bf16.mxu0 %v4335_v30 }
  0xb1   :  { %2458 = vmatmul.mubr.f32.gmra.mrb[6].mxu0 %v3539_v15 }
  0xb2   :  { %2971 = vmatpush3.bf16.msra.mxu0 %v3390_v27  ;;  %2460 = vmatprep.mubr.msk.f32.mxu0 %vm3286_vm0, %v4333_v20 }
  0xb3   :  { %2972 = vmatprep.subr.bf16.mxu0 %v4335_v30 }
  0xb5   :  { %2461 = vmatmul.mubr.f32.gmra.mrb[8].mxu0 %v3580_v7 }
  0xb6   :  { %2974 = vmatpush3.bf16.msra.mxu0 %v3440_v41  ;;  %2463 = vmatprep.mubr.msk.f32.mxu0 %vm3286_vm0, %v4333_v20 }
  0xb7   :  { %2975 = vmatprep.subr.bf16.mxu0 %v4335_v30 }
  0xb9   :  { %2464 = vmatmul.mubr.f32.gmra.mrb[10].mxu0 %v3630_v59 }
  0xba   :  { %2977 = vmatpush3.bf16.msra.mxu0 %v3484_v57  ;;  %2466 = vmatprep.mubr.msk.f32.mxu0 %vm3286_vm0, %v4333_v20 }
  0xbb   :  { %2978 = vmatprep.subr.bf16.mxu0 %v4335_v30 }
  0xbd   :  { %2467 = vmatmul.mubr.f32.gmra.mrb[12].mxu0 %v3686_v8 }
  0xbe   :  { %2980 = vmatpush3.bf16.msra.mxu0 %v3496_v62  ;;  %2501 = vmatprep.mubr.msk.f32.mxu0 %vm3286_vm0, %v4333_v20 }
  0xbf   :  { %2981 = vmatprep.subr.bf16.mxu0 %v4335_v30 }
  0xc2   :  { %2983 = vmatpush3.bf16.msra.mxu0 %v3542_v16 }
  0xc5   :  { %2502 = vmatmul.mubr.f32.vlgmr.msra.gmra.mrb[0].mxu0 %v3379_v24 }
  0xc6   :  { %2504 = vmatprep.mubr.msk.f32.mxu0 %vm3286_vm0, %v4333_v20 }
  0xc9   :  { %2505 = vmatmul.mubr.f32.gmra.mrb[2].mxu0 %v3433_v40 }
  0xca   :  { %2507 = vmatprep.mubr.msk.f32.mxu0 %vm3286_vm0, %v4333_v20 }
  0xcd   :  { %2508 = vmatmul.mubr.f32.gmra.mrb[4].mxu0 %v3487_v58  ;;  %v4353_v58 = vld [vmem:[#allocation2_spill] sm:$0xff] }
  0xce   :  { %2510 = vmatprep.mubr.msk.f32.mxu0 %vm3286_vm0, %v4333_v20 }
  0xd1   :  { %2511 = vmatmul.mubr.f32.gmra.mrb[6].mxu0 %v3539_v15 }
  0xd2   :  { %2513 = vmatprep.mubr.msk.f32.mxu0 %vm3286_vm0, %v4333_v20 }
  0xd5   :  { %2514 = vmatmul.mubr.f32.gmra.mrb[8].mxu0 %v3580_v7 }
  0xd6   :  { %2516 = vmatprep.mubr.msk.f32.mxu0 %vm3286_vm0, %v4333_v20 }
  0xd9   :  { %2517 = vmatmul.mubr.f32.gmra.mrb[10].mxu0 %v3630_v59  ;;  %v4354_v59 = vld [vmem:[#allocation3_spill] sm:$0xff] }
  0xda   :  { %2519 = vmatprep.mubr.msk.f32.mxu0 %vm3286_vm0, %v4333_v20 }
  0xdd   :  { %2520 = vmatmul.mubr.f32.gmra.mrb[12].mxu0 %v3686_v8 }
 0x198   :  { %v899_v24 = vpop.f32.mrb[0].mxu0 }
 0x199   :  { %v939_v40 = vmul.f32 0.03125, %v899_v24  ;;  %v2503_v52 = vpop.f32.mrb[1].mxu0 }
 0x19b   :  { %v3956_v15 = vsub.f32 %v4353_v58, %v939_v40 }
 0x19c   :  { %v905_v31 = vpop.f32.mrb[2].mxu0 }
 0x19d   :  { %v953_v7 = vmul.f32 %v3956_v15, %v3956_v15  ;;  %v940_v42 = vmul.f32 0.03125, %v905_v31  ;;  %v2506_v43 = vpop.f32.mrb[3].mxu0 }
 0x19e   :  { %v4357_v43 = vld [vmem:[#allocation7_spill] sm:$0xff] }
 0x19f   :  { %v3960_v49 = vand.u32 4294901760, %v953_v7  ;;  %v3963_v3 = vsub.f32 %v4354_v59, %v940_v42 }
 0x1a0   :  { %v911_v1 = vpop.f32.mrb[4].mxu0 }
 0x1a1   :  { %v3966_v8 = vsub.f32 %v953_v7, %v3960_v49  ;;  %v954_v2 = vmul.f32 %v3963_v3, %v3963_v3  ;;  %v941_v5 = vmul.f32 0.03125, %v911_v1  ;;  %v2509_v18 = vpop.f32.mrb[5].mxu0  ;;  %v4358_v1 = vld [vmem:[#allocation6_spill] sm:$0xff] }
 0x1a3   :  { %v3970_v32 = vand.u32 4294901760, %v954_v2  ;;  %v3973_v33 = vsub.f32 %v4355_v17, %v941_v5  ;;  %v1043_v46 = vand.u32 4294901760, %v3966_v8 }
 0x1a4   :  { %v917_v21 = vpop.f32.mrb[6].mxu0 }
 0x1a5   :  { %v3977_v44 = vsub.f32 %v954_v2, %v3970_v32  ;;  %v955_v37 = vmul.f32 %v3973_v33, %v3973_v33  ;;  %v942_v47 = vmul.f32 0.03125, %v917_v21  ;;  %v2512_v4 = vpop.f32.mrb[7].mxu0  ;;  %v1044_v61 = vsub.f32 %v3966_v8, %v1043_v46 }
 0x1a7   :  { %v3984_v11 = vand.u32 4294901760, %v955_v37  ;;  %v3987_v55 = vsub.f32 %v4356_v34, %v942_v47  ;;  %v1045_v9 = vand.u32 4294901760, %v1044_v61  ;;  %v1053_v24 = vand.u32 4294901760, %v3977_v44  ;;  %v4359_v34 = vld [vmem:[#allocation9_spill] sm:$0xff] }
 0x1a8   :  { %v923_v40 = vpop.f32.mrb[8].mxu0 }
 0x1a9   :  { %v3991_v52 = vsub.f32 %v955_v37, %v3984_v11  ;;  %v956_v58 = vmul.f32 %v3987_v55, %v3987_v55  ;;  %v943_v31 = vmul.f32 0.03125, %v923_v40  ;;  %v2515_v7 = vpop.f32.mrb[9].mxu0  ;;  %2555 = vmatmul.mubr.f32.vlgmr.msra.gmra.mrb[0].mxu1 %v1045_v9  ;;  %v1054_v42 = vsub.f32 %v3977_v44, %v1053_v24  ;;  %v4360_v40 = vld [vmem:[#allocation8_spill] sm:$0xff] }
 0x1aa   :  { %3010 = vmatpush3.bf16.msra.mxu1 %v4357_v43  ;;  %2557 = vmatprep.mubr.msk.f32.mxu1 %vm3286_vm0, %v4333_v20 }
 0x1ab   :  { %v4001_v59 = vand.u32 4294901760, %v956_v58  ;;  %v4004_v2 = vsub.f32 %v4358_v1, %v943_v31  ;;  %3011 = vmatprep.subr.bf16.mxu1 %v4335_v30  ;;  %v1055_v5 = vand.u32 4294901760, %v1054_v42  ;;  %v1063_v18 = vand.u32 4294901760, %v3991_v52 }
 0x1ac   :  { %v929_v17 = vpop.f32.mrb[10].mxu0 }
 0x1ad   :  { %v4009_v21 = vsub.f32 %v956_v58, %v4001_v59  ;;  %v957_v37 = vmul.f32 %v4004_v2, %v4004_v2  ;;  %v944_v47 = vmul.f32 0.03125, %v929_v17  ;;  %v2518_v4 = vpop.f32.mrb[11].mxu0  ;;  %2558 = vmatmul.mubr.f32.gmra.mrb[2].mxu1 %v1055_v5  ;;  %v1064_v61 = vsub.f32 %v3991_v52, %v1063_v18 }
 0x1ae   :  { %3013 = vmatpush3.bf16.msra.mxu1 %v4359_v34  ;;  %2560 = vmatprep.mubr.msk.f32.mxu1 %vm3286_vm0, %v4333_v20 }
 0x1af   :  { %v4019_v9 = vand.u32 4294901760, %v957_v37  ;;  %v4022_v58 = vsub.f32 %v4360_v40, %v944_v47  ;;  %3014 = vmatprep.subr.bf16.mxu1 %v4335_v30  ;;  %v1065_v31 = vand.u32 4294901760, %v1064_v61  ;;  %v1073_v7 = vand.u32 4294901760, %v4009_v21 }
 0x1b0   :  { %v935_v42 = vpop.f32.mrb[12].mxu0 }
 0x1b1   :  { %v4027_v43 = vsub.f32 %v957_v37, %v4019_v9  ;;  %v958_v1 = vmul.f32 %v4022_v58, %v4022_v58  ;;  %v945_v5 = vmul.f32 0.03125, %v935_v42  ;;  %v2521_v17 = vpop.f32.mrb[13].mxu0  ;;  %2561 = vmatmul.mubr.f32.gmra.mrb[4].mxu1 %v1065_v31  ;;  %v1074_v47 = vsub.f32 %v4009_v21, %v1073_v7 }
 0x1b2   :  { %3016 = vmatpush3.bf16.msra.mxu1 %v3689_v54  ;;  %2563 = vmatprep.mubr.msk.f32.mxu1 %vm3286_vm0, %v4333_v20 }
 0x1b3   :  { %v4037_v4 = vand.u32 4294901760, %v958_v1  ;;  %v4040_v37 = vsub.f32 %v3661_v38, %v945_v5  ;;  %3017 = vmatprep.subr.bf16.mxu1 %v4335_v30  ;;  %v1075_v61 = vand.u32 4294901760, %v1074_v47  ;;  %v1083_v34 = vand.u32 4294901760, %v4027_v43 }
 0x1b5   :  { %v4045_v40 = vsub.f32 %v958_v1, %v4037_v4  ;;  %v959_v31 = vmul.f32 %v4040_v37, %v4040_v37  ;;  %2564 = vmatmul.mubr.f32.gmra.mrb[6].mxu1 %v1075_v61  ;;  %v1084_v54 = vsub.f32 %v4027_v43, %v1083_v34 }
 0x1b6   :  { %3019 = vmatpush3.bf16.msra.mxu1 %v3704_v22  ;;  %2566 = vmatprep.mubr.msk.f32.mxu1 %vm3286_vm0, %v4333_v20 }
 0x1b7   :  { %v4055_v38 = vand.u32 4294901760, %v959_v31  ;;  %3020 = vmatprep.subr.bf16.mxu1 %v4335_v30  ;;  %v1085_v42 = vand.u32 4294901760, %v1084_v54  ;;  %v1093_v1 = vand.u32 4294901760, %v4045_v40 }
 0x1b9   :  { %v4060_v5 = vsub.f32 %v959_v31, %v4055_v38  ;;  %2567 = vmatmul.mubr.f32.gmra.mrb[8].mxu1 %v1085_v42  ;;  %v1094_v17 = vsub.f32 %v4045_v40, %v1093_v1 }
 0x1ba   :  { %3022 = vmatpush3.bf16.msra.mxu1 %v3717_v51  ;;  %2569 = vmatprep.mubr.msk.f32.mxu1 %vm3286_vm0, %v4333_v20 }
 0x1bb   :  { %3023 = vmatprep.subr.bf16.mxu1 %v4335_v30  ;;  %v1095_v22 = vand.u32 4294901760, %v1094_v17  ;;  %v1103_v47 = vand.u32 4294901760, %v4060_v5 }
 0x1bd   :  { %2570 = vmatmul.mubr.f32.gmra.mrb[10].mxu1 %v1095_v22  ;;  %v1104_v61 = vsub.f32 %v4060_v5, %v1103_v47 }
 0x1be   :  { %3025 = vmatpush3.bf16.msra.mxu1 %v3727_v53  ;;  %2572 = vmatprep.mubr.msk.f32.mxu1 %vm3286_vm0, %v4333_v20 }
 0x1bf   :  { %3026 = vmatprep.subr.bf16.mxu1 %v4335_v30  ;;  %v1105_v51 = vand.u32 4294901760, %v1104_v61 }
 0x1c1   :  { %2573 = vmatmul.mubr.f32.gmra.mrb[12].mxu1 %v1105_v51 }
 0x1c2   :  { %3028 = vmatpush3.bf16.msra.mxu1 %v3737_v29  ;;  %2607 = vmatprep.mubr.msk.f32.mxu1 %vm3286_vm0, %v4333_v20 }
 0x1c3   :  { %3029 = vmatprep.subr.bf16.mxu1 %v4335_v30 }
 0x1c6   :  { %3031 = vmatpush3.bf16.msra.mxu1 %v3743_v50 }
 0x1c7   :  { %3032 = vmatprep.subr.bf16.mxu1 %v4335_v30 }
 0x1c9   :  { %2608 = vmatmul.mubr.f32.vlgmr.msra.gmra.mrb[0].mxu1 %v3960_v49 }
 0x1ca   :  { %3034 = vmatpush3.bf16.msra.mxu1 %v3751_v48  ;;  %2610 = vmatprep.mubr.msk.f32.mxu1 %vm3286_vm0, %v4333_v20 }
 0x1cb   :  { %3035 = vmatprep.subr.bf16.mxu1 %v4335_v30 }
 0x1cd   :  { %2611 = vmatmul.mubr.f32.gmra.mrb[2].mxu1 %v3970_v32 }
 0x1ce   :  { %3037 = vmatpush3.bf16.msra.mxu1 %v3758_v60  ;;  %2613 = vmatprep.mubr.msk.f32.mxu1 %vm3286_vm0, %v4333_v20 }
 0x1cf   :  { %3038 = vmatprep.subr.bf16.mxu1 %v4335_v30 }
 0x1d1   :  { %2614 = vmatmul.mubr.f32.gmra.mrb[4].mxu1 %v3984_v11 }
 0x1d2   :  { %3040 = vmatpush3.bf16.msra.mxu1 %v3767_v25  ;;  %2616 = vmatprep.mubr.msk.f32.mxu1 %vm3286_vm0, %v4333_v20 }
 0x1d3   :  { %3041 = vmatprep.subr.bf16.mxu1 %v4335_v30 }
 0x1d5   :  { %2617 = vmatmul.mubr.f32.gmra.mrb[6].mxu1 %v4001_v59 }
 0x1d6   :  { %3043 = vmatpush3.bf16.msra.mxu1 %v3776_v26  ;;  %2619 = vmatprep.mubr.msk.f32.mxu1 %vm3286_vm0, %v4333_v20 }
 0x1d7   :  { %3044 = vmatprep.subr.bf16.mxu1 %v4335_v30 }
 0x1d9   :  { %2620 = vmatmul.mubr.f32.gmra.mrb[8].mxu1 %v4019_v9 }
 0x1da   :  { %3046 = vmatpush3.bf16.msra.mxu1 %v3785_v35  ;;  %2622 = vmatprep.mubr.msk.f32.mxu1 %vm3286_vm0, %v4333_v20 }
 0x1db   :  { %3047 = vmatprep.subr.bf16.mxu1 %v4335_v30 }
 0x1dd   :  { %2623 = vmatmul.mubr.f32.gmra.mrb[10].mxu1 %v4037_v4 }
 0x1de   :  { %3049 = vmatpush3.bf16.msra.mxu1 %v3794_v36  ;;  %2625 = vmatprep.mubr.msk.f32.mxu1 %vm3286_vm0, %v4333_v20  ;;  %v1927_v36 = vld [vmem:[%s4293_s3] ss:$0 sm:$0xff] }
 0x1df   :  { %3050 = vmatprep.subr.bf16.mxu1 %v4335_v30 }
 0x1e1   :  { %2626 = vmatmul.mubr.f32.gmra.mrb[12].mxu1 %v4055_v38 }
 0x1e2   :  { %3052 = vmatpush3.bf16.msra.mxu1 %v3803_v45  ;;  %2660 = vmatprep.mubr.msk.f32.mxu1 %vm3286_vm0, %v4333_v20 }
 0x1e3   :  { %3053 = vmatprep.subr.bf16.mxu1 %v4335_v30 }
 0x1e6   :  { %3055 = vmatpush3.bf16.msra.mxu1 %v3812_v56 }
 0x1e7   :  { %3056 = vmatprep.subr.bf16.mxu1 %v4335_v30 }
 0x1e9   :  { %2661 = vmatmul.mubr.f32.vlgmr.msra.gmra.mrb[0].mxu1 %v3966_v8 }
 0x1ea   :  { %3058 = vmatpush3.bf16.msra.mxu1 %v3337_v12  ;;  %2663 = vmatprep.mubr.msk.f32.mxu1 %vm3286_vm0, %v4333_v20 }
 0x1eb   :  { %3059 = vmatprep.subr.bf16.mxu1 %v4335_v30 }
 0x1ed   :  { %2664 = vmatmul.mubr.f32.gmra.mrb[2].mxu1 %v3977_v44 }
 0x1ee   :  { %3061 = vmatpush3.bf16.msra.mxu1 %v3340_v13  ;;  %2666 = vmatprep.mubr.msk.f32.mxu1 %vm3286_vm0, %v4333_v20 }
 0x1ef   :  { %3062 = vmatprep.subr.bf16.mxu1 %v4335_v30 }
 0x1f1   :  { %2667 = vmatmul.mubr.f32.gmra.mrb[4].mxu1 %v3991_v52 }
 0x1f2   :  { %3064 = vmatpush3.bf16.msra.mxu1 %v3361_v19  ;;  %2669 = vmatprep.mubr.msk.f32.mxu1 %vm3286_vm0, %v4333_v20 }
 0x1f3   :  { %3065 = vmatprep.subr.bf16.mxu1 %v4335_v30 }
 0x1f5   :  { %2670 = vmatmul.mubr.f32.gmra.mrb[6].mxu1 %v4009_v21 }
 0x1f6   :  { %3067 = vmatpush3.bf16.msra.mxu1 %v3390_v27  ;;  %2672 = vmatprep.mubr.msk.f32.mxu1 %vm3286_vm0, %v4333_v20 }
 0x1f7   :  { %3068 = vmatprep.subr.bf16.mxu1 %v4335_v30 }
 0x1f9   :  { %2673 = vmatmul.mubr.f32.gmra.mrb[8].mxu1 %v4027_v43 }
 0x1fa   :  { %3070 = vmatpush3.bf16.msra.mxu1 %v3440_v41  ;;  %2675 = vmatprep.mubr.msk.f32.mxu1 %vm3286_vm0, %v4333_v20 }
 0x1fb   :  { %3071 = vmatprep.subr.bf16.mxu1 %v4335_v30 }
 0x1fd   :  { %2676 = vmatmul.mubr.f32.gmra.mrb[10].mxu1 %v4045_v40 }
 0x1fe   :  { %3073 = vmatpush3.bf16.msra.mxu1 %v3484_v57  ;;  %2678 = vmatprep.mubr.msk.f32.mxu1 %vm3286_vm0, %v4333_v20 }
 0x1ff   :  { %3074 = vmatprep.subr.bf16.mxu1 %v4335_v30 }
 0x201   :  { %2679 = vmatmul.mubr.f32.gmra.mrb[12].mxu1 %v4060_v5 }
 0x202   :  { %3076 = vmatpush3.bf16.msra.mxu1 %v3496_v62  ;;  %2713 = vmatprep.mubr.msk.f32.mxu1 %vm3286_vm0, %v4333_v20 }
 0x203   :  { %3077 = vmatprep.subr.bf16.mxu1 %v4335_v30 }
 0x206   :  { %3079 = vmatpush3.bf16.msra.mxu1 %v3542_v16 }
 0x207   :  { %3080 = vmatprep.subr.bf16.mxu1 %v4335_v30 }
 0x209   :  { %2714 = vmatmul.mubr.f32.vlgmr.msra.gmra.mrb[0].mxu1 %v1043_v46 }
 0x20a   :  { %3082 = vmatpush3.bf16.msra.mxu1 %v4343_v10  ;;  %2716 = vmatprep.mubr.msk.f32.mxu1 %vm3286_vm0, %v4333_v20 }
 0x20b   :  { %3083 = vmatprep.subr.bf16.mxu1 %v4335_v30 }
 0x20d   :  { %2717 = vmatmul.mubr.f32.gmra.mrb[2].mxu1 %v1053_v24 }
 0x20e   :  { %3085 = vmatpush3.bf16.msra.mxu1 %v4345_v63  ;;  %2719 = vmatprep.mubr.msk.f32.mxu1 %vm3286_vm0, %v4333_v20 }
 0x20f   :  { %3086 = vmatprep.subr.bf16.mxu1 %v4335_v30 }
 0x211   :  { %2720 = vmatmul.mubr.f32.gmra.mrb[4].mxu1 %v1063_v18 }
 0x212   :  { %3088 = vmatpush3.bf16.msra.mxu1 %v4347_v6  ;;  %2722 = vmatprep.mubr.msk.f32.mxu1 %vm3286_vm0, %v4333_v20 }
 0x213   :  { %3089 = vmatprep.subr.bf16.mxu1 %v4335_v30 }
 0x215   :  { %2723 = vmatmul.mubr.f32.gmra.mrb[6].mxu1 %v1073_v7 }
 0x216   :  { %3091 = vmatpush3.bf16.msra.mxu1 %v3663_v39  ;;  %2725 = vmatprep.mubr.msk.f32.mxu1 %vm3286_vm0, %v4333_v20 }
 0x217   :  { %3092 = vmatprep.subr.bf16.mxu1 %v4335_v30 }
 0x219   :  { %2726 = vmatmul.mubr.f32.gmra.mrb[8].mxu1 %v1083_v34 }
 0x21a   :  { %3094 = vmatpush3.bf16.msra.mxu1 %v3665_v0  ;;  %2728 = vmatprep.mubr.msk.f32.mxu1 %vm3286_vm0, %v4333_v20 }
 0x21b   :  { %3095 = vmatprep.subr.bf16.mxu1 %v4335_v30 }
 0x21d   :  { %2729 = vmatmul.mubr.f32.gmra.mrb[10].mxu1 %v1093_v1 }
 0x21e   :  { %3097 = vmatpush3.bf16.msra.mxu1 %v4350_v28  ;;  %2731 = vmatprep.mubr.msk.f32.mxu1 %vm3286_vm0, %v4333_v20 }
 0x21f   :  { %3098 = vmatprep.subr.bf16.mxu1 %v4335_v30 }
 0x221   :  { %2732 = vmatmul.mubr.f32.gmra.mrb[12].mxu1 %v1103_v47 }
 0x222   :  { %3100 = vmatpush3.bf16.msra.mxu1 %v4351_v23  ;;  %2766 = vmatprep.mubr.msk.f32.mxu1 %vm3286_vm0, %v4333_v20 }
 0x223   :  { %3101 = vmatprep.subr.bf16.mxu1 %v4335_v30 }
 0x226   :  { %3103 = vmatpush3.bf16.msra.mxu1 %v4352_v14 }
 0x227   :  { %3104 = vmatprep.subr.bf16.mxu1 %v4335_v30 }
 0x229   :  { %2767 = vmatmul.mubr.f32.vlgmr.msra.gmra.mrb[0].mxu1 %v3960_v49 }
 0x22a   :  { %3106 = vmatpush3.bf16.msra.mxu1 %v3337_v12  ;;  %2769 = vmatprep.mubr.msk.f32.mxu1 %vm3286_vm0, %v4333_v20 }
 0x22b   :  { %3107 = vmatprep.subr.bf16.mxu1 %v4335_v30 }
 0x22d   :  { %2770 = vmatmul.mubr.f32.gmra.mrb[2].mxu1 %v3970_v32 }
 0x22e   :  { %3109 = vmatpush3.bf16.msra.mxu1 %v3340_v13  ;;  %2772 = vmatprep.mubr.msk.f32.mxu1 %vm3286_vm0, %v4333_v20 }
 0x22f   :  { %3110 = vmatprep.subr.bf16.mxu1 %v4335_v30 }
 0x231   :  { %2773 = vmatmul.mubr.f32.gmra.mrb[4].mxu1 %v3984_v11 }
 0x232   :  { %3112 = vmatpush3.bf16.msra.mxu1 %v3361_v19  ;;  %2775 = vmatprep.mubr.msk.f32.mxu1 %vm3286_vm0, %v4333_v20 }
 0x233   :  { %3113 = vmatprep.subr.bf16.mxu1 %v4335_v30 }
 0x235   :  { %2776 = vmatmul.mubr.f32.gmra.mrb[6].mxu1 %v4001_v59 }
 0x236   :  { %3115 = vmatpush3.bf16.msra.mxu1 %v3390_v27  ;;  %2778 = vmatprep.mubr.msk.f32.mxu1 %vm3286_vm0, %v4333_v20 }
 0x237   :  { %3116 = vmatprep.subr.bf16.mxu1 %v4335_v30 }
 0x239   :  { %2779 = vmatmul.mubr.f32.gmra.mrb[8].mxu1 %v4019_v9 }
 0x23a   :  { %3118 = vmatpush3.bf16.msra.mxu1 %v3440_v41  ;;  %2781 = vmatprep.mubr.msk.f32.mxu1 %vm3286_vm0, %v4333_v20 }
 0x23b   :  { %3119 = vmatprep.subr.bf16.mxu1 %v4335_v30 }
 0x23d   :  { %2782 = vmatmul.mubr.f32.gmra.mrb[10].mxu1 %v4037_v4 }
 0x23e   :  { %3121 = vmatpush3.bf16.msra.mxu1 %v3484_v57  ;;  %2784 = vmatprep.mubr.msk.f32.mxu1 %vm3286_vm0, %v4333_v20 }
 0x23f   :  { %3122 = vmatprep.subr.bf16.mxu1 %v4335_v30 }
 0x241   :  { %2785 = vmatmul.mubr.f32.gmra.mrb[12].mxu1 %v4055_v38 }
 0x242   :  { %3124 = vmatpush3.bf16.msra.mxu1 %v3496_v62  ;;  %2819 = vmatprep.mubr.msk.f32.mxu1 %vm3286_vm0, %v4333_v20 }
 0x243   :  { %3125 = vmatprep.subr.bf16.mxu1 %v4335_v30 }
 0x246   :  { %3127 = vmatpush3.bf16.msra.mxu1 %v3542_v16 }
 0x249   :  { %2820 = vmatmul.mubr.f32.vlgmr.msra.gmra.mrb[0].mxu1 %v3960_v49 }
 0x24a   :  { %2822 = vmatprep.mubr.msk.f32.mxu1 %vm3286_vm0, %v4333_v20 }
 0x24d   :  { %2823 = vmatmul.mubr.f32.gmra.mrb[2].mxu1 %v3970_v32 }
 0x24e   :  { %2825 = vmatprep.mubr.msk.f32.mxu1 %vm3286_vm0, %v4333_v20 }
 0x251   :  { %2826 = vmatmul.mubr.f32.gmra.mrb[4].mxu1 %v3984_v11 }
 0x252   :  { %2828 = vmatprep.mubr.msk.f32.mxu1 %vm3286_vm0, %v4333_v20 }
 0x255   :  { %2829 = vmatmul.mubr.f32.gmra.mrb[6].mxu1 %v4001_v59 }
 0x256   :  { %2831 = vmatprep.mubr.msk.f32.mxu1 %vm3286_vm0, %v4333_v20 }
 0x259   :  { %2832 = vmatmul.mubr.f32.gmra.mrb[8].mxu1 %v4019_v9 }
 0x25a   :  { %2834 = vmatprep.mubr.msk.f32.mxu1 %vm3286_vm0, %v4333_v20 }
 0x25d   :  { %2835 = vmatmul.mubr.f32.gmra.mrb[10].mxu1 %v4037_v4 }
 0x25e   :  { %2837 = vmatprep.mubr.msk.f32.mxu1 %vm3286_vm0, %v4333_v20  ;;  %v1926_v20 = vld [vmem:[%s4292_s2] ss:$0 sm:$0xff] }
 0x261   :  { %2838 = vmatmul.mubr.f32.gmra.mrb[12].mxu1 %v4055_v38 }
 0x31c   :  { %v1819_v12 = vpop.f32.mrb[0].mxu1 }
 0x31d   :  { %v1859_v13 = vmul.f32 0.03125, %v1819_v12  ;;  %v2821_v19 = vpop.f32.mrb[1].mxu1 }
 0x31f   :  { %v1866_v27 = vadd.f32 1e-05, %v1859_v13 }
 0x320   :  { %v1825_v41 = vpop.f32.mrb[2].mxu1 }
 0x321   :  { %3271 = vrsqrt.f32 %v1866_v27  ;;  %v1860_v57 = vmul.f32 0.03125, %v1825_v41  ;;  %v2824_v62 = vpop.f32.mrb[3].mxu1 }
 0x323   :  { %v1867_v16 = vadd.f32 1e-05, %v1860_v57 }
 0x324   :  { %v1831_v39 = vpop.f32.mrb[4].mxu1 }
 0x325   :  { %3273 = vrsqrt.f32 %v1867_v16  ;;  %v1861_v0 = vmul.f32 0.03125, %v1831_v39  ;;  %v2827_v30 = vpop.f32.mrb[5].mxu1 }
 0x327   :  { %v1868_v53 = vadd.f32 1e-05, %v1861_v0 }
 0x328   :  { %v1837_v29 = vpop.f32.mrb[6].mxu1 }
 0x329   :  { %3275 = vrsqrt.f32 %v1868_v53  ;;  %v1862_v50 = vmul.f32 0.03125, %v1837_v29  ;;  %v2830_v48 = vpop.f32.mrb[7].mxu1 }
 0x32b   :  { %v3272_v60 = vpop.eup %3271  ;;  %v1869_v25 = vadd.f32 1e-05, %v1862_v50 }
 0x32c   :  { %v1887_v26 = vmul.f32 %v3272_v60, %v1926_v20  ;;  %v1843_v35 = vpop.f32.mrb[8].mxu1 }
 0x32d   :  { %3277 = vrsqrt.f32 %v1869_v25  ;;  %v1863_v45 = vmul.f32 0.03125, %v1843_v35  ;;  %v2833_v56 = vpop.f32.mrb[9].mxu1 }
 0x32e   :  { %v1894_v10 = vmul.f32 %v1887_v26, %v3956_v15 }
 0x32f   :  { %v3274_v63 = vpop.eup %3273  ;;  %v1870_v6 = vadd.f32 1e-05, %v1863_v45 }
 0x330   :  { %v1908_v28 = vadd.f32 %v1927_v36, %v1894_v10  ;;  %v1888_v23 = vmul.f32 %v3274_v63, %v1926_v20  ;;  %v1849_v14 = vpop.f32.mrb[10].mxu1 }
 0x331   :  { %3279 = vrsqrt.f32 %v1870_v6  ;;  %v1864_v49 = vmul.f32 0.03125, %v1849_v14  ;;  %v2836_v8 = vpop.f32.mrb[11].mxu1 }
 0x332   :  { %1915 = vst [vmem:[%s4294_s4] sm:$0xff] %v1908_v28  ;;  %v1895_v32 = vmul.f32 %v1888_v23, %v3963_v3 }
 0x333   :  { %v3276_v46 = vpop.eup %3275  ;;  %v1871_v44 = vadd.f32 1e-05, %v1864_v49 }
 0x334   :  { %v1909_v11 = vadd.f32 %v1927_v36, %v1895_v32  ;;  %v1889_v24 = vmul.f32 %v3276_v46, %v1926_v20  ;;  %v1855_v52 = vpop.f32.mrb[12].mxu1 }
 0x335   :  { %3281 = vrsqrt.f32 %v1871_v44  ;;  %v1865_v15 = vmul.f32 0.03125, %v1855_v52  ;;  %v2839_v59 = vpop.f32.mrb[13].mxu1 }
 0x336   :  { %1916 = vst [vmem:[%s4294_s4 + $0x8] sm:$0xff] %v1909_v11  ;;  %v1896_v18 = vmul.f32 %v1889_v24, %v3973_v33 }
 0x337   :  { %v3278_v21 = vpop.eup %3277  ;;  %v1872_v9 = vadd.f32 1e-05, %v1865_v15 }
 0x338   :  { %v1910_v7 = vadd.f32 %v1927_v36, %v1896_v18  ;;  %v1890_v43 = vmul.f32 %v3278_v21, %v1926_v20 }
 0x339   :  { %3283 = vrsqrt.f32 %v1872_v9 }
 0x33a   :  { %1917 = vst [vmem:[%s4294_s4 + $0x10] sm:$0xff] %v1910_v7  ;;  %v1897_v3 = vmul.f32 %v1890_v43, %v3987_v55 }
 0x33b   :  { %v3280_v4 = vpop.eup %3279 }
 0x33c   :  { %v1911_v34 = vadd.f32 %v1927_v36, %v1897_v3  ;;  %v1891_v40 = vmul.f32 %v3280_v4, %v1926_v20 }
 0x33e   :  { %1918 = vst [vmem:[%s4294_s4 + $0x18] sm:$0xff] %v1911_v34  ;;  %v1898_v33 = vmul.f32 %v1891_v40, %v4004_v2 }
 0x33f   :  { %v3282_v31 = vpop.eup %3281 }
 0x340   :  { %v1912_v54 = vadd.f32 %v1927_v36, %v1898_v33  ;;  %v1892_v38 = vmul.f32 %v3282_v31, %v1926_v20 }
 0x342   :  { %1919 = vst [vmem:[%s4294_s4 + $0x20] sm:$0xff] %v1912_v54  ;;  %v1899_v42 = vmul.f32 %v1892_v38, %v4022_v58 }
 0x343   :  { %v3284_v1 = vpop.eup %3283 }
 0x344   :  { %v1913_v55 = vadd.f32 %v1927_v36, %v1899_v42  ;;  %v1893_v5 = vmul.f32 %v3284_v1, %v1926_v20 }
 0x346   :  { %1920 = vst [vmem:[%s4294_s4 + $0x28] sm:$0xff] %v1913_v55  ;;  %v1900_v17 = vmul.f32 %v1893_v5, %v4040_v37 }
 0x348   :  { %v1914_v22 = vadd.f32 %v1927_v36, %v1900_v17 }
 0x34a   :  { %1921 = vst [vmem:[%s4294_s4 + $0x30] sm:$0x3] %v1914_v22 }

</bundles_post_ra>
